<compile_context>
chip_gen: v6e
topology: v6e:2x2x1
jax: 0.10.0
libtpu: 0.0.40
codegen_flags: <defaults>
</compile_context>

<pallas_src>
import functools

import jax
import jax.numpy as jnp
from jax.experimental import pallas as pl
from jax.experimental.pallas import tpu as pltpu


def _round_up(v, m):
    return (v + m - 1) // m * m


def _choose_dim(dim, gran, cap, *, exact_gran=False):
    """Pick (tile, padded_dim) for one matmul dimension.

    If the dim fits a single block it is used as-is (full-array-dim blocks are
    exempt from the 8/128 divisibility rule) unless exact_gran forces rounding
    (used for K, where zero-padding keeps the contraction exact). Otherwise the
    dim is padded to hardware granularity and tiled with the largest
    granularity-multiple divisor <= cap; if only tiny divisors exist, fall back
    to a cap-sized tile with < one tile of rim padding.
    """
    d0 = _round_up(dim, gran) if exact_gran else dim
    if d0 <= cap:
        return d0, d0
    padded = _round_up(dim, gran)
    best = gran
    t = gran
    while t <= cap:
        if padded % t == 0:
            best = t
        t += gran
    if 2 * best >= cap:
        return best, padded
    return cap, _round_up(dim, cap)


def _tile_caps():
    """Generation-aware (tm_cap, tn_cap, tk_cap, vmem_limit_bytes)."""
    try:
        vmem_cap = int(pltpu.get_tpu_info().vmem_capacity_bytes)
    except Exception:
        vmem_cap = 64 * 1024 * 1024  # assume the smallest VMEM (v7x-like)
    if vmem_cap >= 100 * 1024 * 1024:       # v5e / v6e: 128 MiB physical VMEM
        return 1024, 1024, 2048, 96 * 1024 * 1024
    return 512, 512, 1024, 48 * 1024 * 1024  # v7x: 64 MiB physical VMEM


# ----------------------------- kernels --------------------------------------

def _mm_single_k(x_ref, w_ref, o_ref):
    """Whole K in one block: dot straight into the output tile."""
    o_ref[...] = jnp.dot(
        x_ref[...], w_ref[...], preferred_element_type=jnp.float32
    ).astype(o_ref.dtype)


def _mm_multi_k_f32(x_ref, w_ref, o_ref):
    """f32 output: accumulate directly into the K-resident output tile."""
    k = pl.program_id(2)
    part = jnp.dot(x_ref[...], w_ref[...], preferred_element_type=jnp.float32)

    @pl.when(k == 0)
    def _():
        o_ref[...] = part

    @pl.when(k > 0)
    def _():
        o_ref[...] += part


def _mm_multi_k_generic(x_ref, w_ref, o_ref, acc_ref):
    """Non-f32 output: accumulate in f32 scratch, cast once on the last step."""
    k = pl.program_id(2)
    part = jnp.dot(x_ref[...], w_ref[...], preferred_element_type=jnp.float32)

    @pl.when(k == 0)
    def _():
        acc_ref[...] = part

    @pl.when(k > 0)
    def _():
        acc_ref[...] += part

    @pl.when(k == pl.num_programs(2) - 1)
    def _():
        o_ref[...] = acc_ref[...].astype(o_ref.dtype)


# ----------------------------- wrapper ---------------------------------------

@functools.partial(jax.jit, static_argnames=("use_bf16", "force_pallas"))
def homeostatic_plasticity_forward(x, synaptic_weights, *, use_bf16=False,
                                   force_pallas=False):
    """output = x @ synaptic_weights via a tiled Pallas MXU matmul."""
    M, K = x.shape
    K2, N = synaptic_weights.shape
    assert K == K2, "input_size mismatch"
    out_dtype = jnp.promote_types(x.dtype, synaptic_weights.dtype)

    # Tiny problems (incl. the module's real forward shape): pad + launch +
    # slice overhead dwarfs the matmul; a fused XLA dot is strictly faster.
    if not force_pallas and (M * N * K) <= (1 << 20):
        return jnp.dot(x, synaptic_weights).astype(out_dtype)

    if use_bf16:
        x = x.astype(jnp.bfloat16)
        synaptic_weights = synaptic_weights.astype(jnp.bfloat16)

    tm_cap, tn_cap, tk_cap, vmem_limit = _tile_caps()
    tm, Mp = _choose_dim(M, 8, tm_cap)
    tk, Kp = _choose_dim(K, 128, tk_cap, exact_gran=True)  # zero-pad K: exact
    tn, Np = _choose_dim(N, 128, tn_cap)

    # Pad only the thin rim, and only when actually needed.
    xp = x if (Mp == M and Kp == K) else jnp.pad(x, ((0, Mp - M), (0, Kp - K)))
    wp = (synaptic_weights if (Kp == K and Np == N)
          else jnp.pad(synaptic_weights, ((0, Kp - K), (0, Np - N))))

    k_steps = Kp // tk
    in_itemsize = jnp.dtype(xp.dtype).itemsize
    cost = pl.CostEstimate(  # reflects the padded work actually executed
        flops=2 * Mp * Np * Kp,
        transcendentals=0,
        bytes_accessed=((Mp * Kp + Kp * Np) * in_itemsize
                        + Mp * Np * jnp.dtype(out_dtype).itemsize),
    )

    if k_steps == 1:
        grid = (Mp // tm, Np // tn)
        dim_sem = ("parallel", "parallel")
        kernel = _mm_single_k
        in_specs = [pl.BlockSpec((tm, Kp), lambda i, j: (i, 0)),
                    pl.BlockSpec((Kp, tn), lambda i, j: (0, j))]
        out_spec = pl.BlockSpec((tm, tn), lambda i, j: (i, j))
        scratch = []
    else:
        grid = (Mp // tm, Np // tn, k_steps)
        dim_sem = ("parallel", "parallel", "arbitrary")
        in_specs = [pl.BlockSpec((tm, tk), lambda i, j, k: (i, k)),
                    pl.BlockSpec((tk, tn), lambda i, j, k: (k, j))]
        out_spec = pl.BlockSpec((tm, tn), lambda i, j, k: (i, j))
        if jnp.dtype(out_dtype) == jnp.dtype(jnp.float32):
            kernel = _mm_multi_k_f32          # accumulate straight into o_ref
            scratch = []
        else:
            kernel = _mm_multi_k_generic
            scratch = [pltpu.VMEM((tm, tn), jnp.float32)]

    out_p = pl.pallas_call(
        kernel,
        out_shape=jax.ShapeDtypeStruct((Mp, Np), out_dtype),
        grid_spec=pltpu.PrefetchScalarGridSpec(
            num_scalar_prefetch=0,
            grid=grid,
            in_specs=in_specs,
            out_specs=out_spec,
            scratch_shapes=scratch,
        ),
        compiler_params=pltpu.CompilerParams(
            dimension_semantics=dim_sem,
            vmem_limit_bytes=vmem_limit,
        ),
        cost_estimate=cost,
    )(xp, wp)

    if Mp == M and Np == N:
        return out_p
    return out_p[:M, :N]


if __name__ == "__main__":
    # Deterministic synthetic parameters mirroring the PyTorch module
    # (torch.randn(input_size, output_size) synaptic_weights).
    input_size = 32
    output_size = 64
    batch = 8

    key = jax.random.PRNGKey(0)
    kx, kw = jax.random.split(key)

    x = jax.random.normal(kx, (batch, input_size), dtype=jnp.float32)
    synaptic_weights = jax.random.normal(
        kw, (input_size, output_size), dtype=jnp.float32
    )
    ref = x @ synaptic_weights

    # Module-sized forward through the Pallas path (default dispatch would
    # short-circuit this tiny shape to a plain XLA dot).
    out = jax.block_until_ready(
        homeostatic_plasticity_forward(x, synaptic_weights, force_pallas=True))
    assert out.shape == (batch, output_size)
    assert jnp.allclose(out, ref, atol=1e-5, rtol=1e-5)

    # Default dispatch (tiny-shape fast path) must agree.
    out_small = jax.block_until_ready(
        homeostatic_plasticity_forward(x, synaptic_weights))
    assert jnp.allclose(out_small, ref, atol=1e-5, rtol=1e-5)

    # bf16 input path (f32 accumulation / f32 output), loose tolerance.
    out_bf16 = jax.block_until_ready(
        homeostatic_plasticity_forward(x, synaptic_weights,
                                       use_bf16=True, force_pallas=True))
    assert out_bf16.dtype == jnp.float32
    assert jnp.allclose(out_bf16, ref, atol=0.3, rtol=0.05)

    # Larger non-divisible shape: exercises rim padding, multi-K accumulation
    # on v7x-class caps, and the single-K full-dim path on v5e/v6e-class caps.
    xb = jax.random.normal(kx, (300, 1500), dtype=jnp.float32)
    wb = jax.random.normal(kw, (1500, 700), dtype=jnp.float32)
    outb = jax.block_until_ready(homeostatic_plasticity_forward(xb, wb))
    refb = xb @ wb
    assert outb.shape == (300, 700)
    assert jnp.allclose(outb, refb, atol=3e-3, rtol=3e-3)

    print("KERNEL_OK")
</pallas_src>

<mosaic_0001>
module attributes {stable_mosaic.version = 11 : i64} {
  func.func @_mm_single_k(%arg0: i32, %arg1: i32, %arg2: memref<8x128xf32, #tpu.memory_space<vmem>>, %arg3: memref<128x64xf32, #tpu.memory_space<vmem>>, %arg4: memref<8x64xf32, #tpu.memory_space<vmem>>) attributes {dimension_semantics = [#tpu.dimension_semantics<parallel>, #tpu.dimension_semantics<parallel>], iteration_bounds = array<i64: 1, 1>, scalar_prefetch = 0 : i64, scratch_operands = 0 : i64, tpu.core_type = #tpu.core_type<tc>, window_params = [{transform_indices = @transform_0, window_bounds = array<i64: 8, 128>}, {transform_indices = @transform_1, window_bounds = array<i64: 128, 64>}, {transform_indices = @transform_2, window_bounds = array<i64: 8, 64>}]} {
    %c0 = arith.constant 0 : index
    %c0_0 = arith.constant 0 : index
    %0 = vector.load %arg2[%c0, %c0_0] : memref<8x128xf32, #tpu.memory_space<vmem>>, vector<8x128xf32>
    %c0_1 = arith.constant 0 : index
    %c0_2 = arith.constant 0 : index
    %1 = vector.load %arg3[%c0_1, %c0_2] : memref<128x64xf32, #tpu.memory_space<vmem>>, vector<128x64xf32>
    %cst = arith.constant dense<0.000000e+00> : vector<8x64xf32>
    %2 = tpu.matmul %0, %1, %cst {dimension_numbers = #tpu.dot_dimension_numbers<[1], [0], [0], [1], [0, 0, 1, 1], [], []>} : vector<8x128xf32>, vector<128x64xf32>, vector<8x64xf32> -> vector<8x64xf32>
    %c0_3 = arith.constant 0 : index
    %c0_4 = arith.constant 0 : index
    %3 = vector.load %arg4[%c0_3, %c0_4] : memref<8x64xf32, #tpu.memory_space<vmem>>, vector<8x64xf32>
    tpu.vector_store %arg4[%c0_3, %c0_4], %2 {strides = array<i32>} : memref<8x64xf32, #tpu.memory_space<vmem>>, vector<8x64xf32>,
    return
  }
  func.func @transform_0(%arg0: i32, %arg1: i32) -> (i32, i32) {
    %c0_i32 = arith.constant 0 : i32
    %c0_i32_0 = arith.constant 0 : i32
    return %arg0, %c0_i32 : i32, i32
  }
  func.func @transform_1(%arg0: i32, %arg1: i32) -> (i32, i32) {
    %c0_i32 = arith.constant 0 : i32
    %c0_i32_0 = arith.constant 0 : i32
    return %c0_i32, %arg1 : i32, i32
  }
  func.func @transform_2(%arg0: i32, %arg1: i32) -> (i32, i32) {
    %c0_i32 = arith.constant 0 : i32
    return %arg0, %arg1 : i32, i32
  }
}

</mosaic_0001>

<bundles_post_ra>
// kernel: homeostatic_plasticity_forward.1
= control target key start
LH: loop header
LB: loop body
LE: loop exit
PB: predicated region body
PF: predicated region fallthrough
CT: control target
= control target key end

     0   :  { %v192_v1 = vmov 0.0   ;;  %vm193_vm0 = vmmov 0   ;;  %s264_s0 = inlined_call_operand.vmem [shape: f32[8,128], index: 0, kind: input, shape index: {}]   ;;  %s265_s1 = inlined_call_operand.vmem [shape: f32[128,64], index: 1, kind: input, shape index: {}]   ;;  %s266_s2 = inlined_call_operand.hbm [shape: f32[8,64], index: 2, kind: output, shape index: {}]  }
   0x1   :  { %v28_v0 = vld [vmem:[%s265_s1 + $0x78] sm:$0xff]  ;;  %132 = vmatprep.subr.mxu0 %v192_v1  ;;  %v27_v2 = vld [vmem:[%s265_s1 + $0x70] sm:$0xff]  ;;  %164 = vmatprep.mubr.msk.f32.mxu0 %vm193_vm0, %v192_v1  ;;  %v26_v3 = vld [vmem:[%s265_s1 + $0x68] sm:$0xff] }
   0x2   :  { %133 = vmatpush3.msra.mxu0 %v28_v0  ;;  %v25_v4 = vld [vmem:[%s265_s1 + $0x60] sm:$0xff] }
   0x3   :  { %134 = vmatprep.subr.mxu0 %v192_v1 }
   0x4   :  { %135 = vmatpush3.msra.mxu0 %v27_v2 }
   0x5   :  { %136 = vmatprep.subr.mxu0 %v192_v1 }
   0x6   :  { %7 = vsyncpa [#allocation3], 0  ;;  %137 = vmatpush3.msra.mxu0 %v26_v3  ;;  %v24_v5 = vld [vmem:[%s265_s1 + $0x58] sm:$0xff]  ;;  %v23_v6 = vld [vmem:[%s265_s1 + $0x50] sm:$0xff]  ;;  %s194_s15 = smov [#allocation2]   ;;  %vm99_vm1 = vcmask 523264  }
   0x7   :  { %138 = vmatprep.subr.mxu0 %v192_v1  ;;  %v22_v7 = vld [vmem:[%s265_s1 + $0x48] sm:$0xff]  ;;  %v21_v8 = vld [vmem:[%s265_s1 + $0x40] sm:$0xff]  ;;  %v20_v9 = vld [vmem:[%s265_s1 + $0x38] sm:$0xff]  ;;  %s107_s16 = sshll.u32 %s194_s15, 4  ;;  %s108_s16 = int_to_ptr.vmem [resolvable:$true] %s107_s16 }
   0x8   :  { %139 = vmatpush3.msra.mxu0 %v25_v4  ;;  %v19_v10 = vld [vmem:[%s265_s1 + $0x30] sm:$0xff]  ;;  %v18_v11 = vld [vmem:[%s265_s1 + $0x28] sm:$0xff]  ;;  %v17_v12 = vld [vmem:[%s265_s1 + $0x20] sm:$0xff]  ;;  %s170_s17 = scalar_lea.vmem %s108_s16, 128  ;;  %p175_p1 = scmp.lt.s32.totalorder %s108_s16, %s108_s16 }
   0x9   :  { %140 = vmatprep.subr.mxu0 %v192_v1  ;;  %v16_v13 = vld [vmem:[%s265_s1 + $0x18] sm:$0xff]  ;;  %v15_v14 = vld [vmem:[%s265_s1 + $0x10] sm:$0xff]  ;;  %v14_v15 = vld [vmem:[%s265_s1 + $0x8] sm:$0xff]  ;;  %p171_p0 = scmp.ne.s32.totalorder %s108_s16, %s170_s17  ;;  %p176_p2 = scmp.lt.s32.totalorder %s170_s17, %s170_s17 }
   0xa   :  { %141 = vmatpush3.msra.mxu0 %v24_v5  ;;  %v13_v16 = vld [vmem:[%s265_s1] sm:$0xff] }
   0xb   :  { %142 = vmatprep.subr.mxu0 %v192_v1  ;;  %v12_v17 = vld [vmem:[%s264_s0] sm:$0xff]  ;;  %p177_p3 = por %p176_p2, %p175_p1 }
   0xc   :  { %143 = vmatpush3.msra.mxu0 %v23_v6 }
   0xd   :  { %144 = vmatprep.subr.mxu0 %v192_v1  ;;  %p178_p4 = pnand %p177_p3, %p171_p0 }
   0xe   :  { %145 = vmatpush3.msra.mxu0 %v22_v7 }
   0xf   :  { %146 = vmatprep.subr.mxu0 %v192_v1 }
  0x10   :  { %147 = vmatpush3.msra.mxu0 %v21_v8 }
  0x11   :  { %148 = vmatprep.subr.mxu0 %v192_v1 }
  0x12   :  { %149 = vmatpush3.msra.mxu0 %v20_v9 }
  0x13   :  { %150 = vmatprep.subr.mxu0 %v192_v1 }
  0x14   :  { %151 = vmatpush3.msra.mxu0 %v19_v10 }
  0x15   :  { %152 = vmatprep.subr.mxu0 %v192_v1 }
  0x16   :  { %153 = vmatpush3.msra.mxu0 %v18_v11 }
  0x17   :  { %154 = vmatprep.subr.mxu0 %v192_v1 }
  0x18   :  { %155 = vmatpush3.msra.mxu0 %v17_v12 }
  0x19   :  { %156 = vmatprep.subr.mxu0 %v192_v1 }
  0x1a   :  { %157 = vmatpush3.msra.mxu0 %v16_v13 }
  0x1b   :  { %158 = vmatprep.subr.mxu0 %v192_v1 }
  0x1c   :  { %159 = vmatpush3.msra.mxu0 %v15_v14 }
  0x1d   :  { %160 = vmatprep.subr.mxu0 %v192_v1 }
  0x1e   :  { %161 = vmatpush3.msra.mxu0 %v14_v15 }
  0x1f   :  { %162 = vmatprep.subr.mxu0 %v192_v1 }
  0x20   :  { %163 = vmatpush3.msra.mxu0 %v13_v16 }
  0x21   :  { %165 = vmatmul.mubr.f32.vlgmr.msra.gmra.mxu0 %v12_v17 }
  0xe1   :  { %v95_v18 = vpop.f32.mrf.mxu0 }
  0xe2   :  { %100 = vst.msk [vmem:[#allocation2] sm:$0xff] %vm99_vm1, %v95_v18 }
  0xe3   :  { %v166_v19 = vpop.f32.mrf.mxu0 }
  0xe4   :  { %181 = shalt.err (!%p178_p4)
}
  0xe5   :  { %110 = dma.vmem_to_hbm [thread:$0]  %s108_s16, 128, %s266_s2, [#allocation3]  }
  0xe6   :  { %190 = dma.done.wait [#allocation3], 128  }
  0xe7   :  { %191 = vsyncadd [#allocation3], 4294967168 }
  0xe8   :  { %114 = vsyncpa [#allocation3], 1 }

</bundles_post_ra>
